<compile_context>
chip_gen: v5e
topology: v5e:2x2
jax: 0.10.0
libtpu: 0.0.40
codegen_flags: <defaults>
</compile_context>

<pallas_src>
import numpy as np
import jax
import jax.numpy as jnp
from jax import lax
from jax.experimental import pallas as pl
from jax.experimental.pallas import tpu as pltpu


def _shift_down(v, axis, pad_val):
  """prev[i] = v[i-1] along `axis`, prev[0] = pad_val (the k=3/s=2/p=1 left-halo tap)."""
  length = v.shape[axis]
  pad_shape = v.shape[:axis] + (1,) + v.shape[axis + 1:]
  pad = jnp.full(pad_shape, pad_val, dtype=v.dtype)
  body = lax.slice_in_dim(v, 0, length - 1, axis=axis)
  return jnp.concatenate([pad, body], axis=axis)


def _select_lanes(v, sel):
  """Exact contraction of v's lane axis with a 0/1 selection matrix, on the MXU.

  v: (Do, Ho, W) finite f32, sel: (W, K) f32 with entries in {0, 1}.
  Lane-axis decimation (stride-2 pooling) is done as a matmul instead of strided lane
  slices.  v is split into bf16x3 pieces so the selection is exact f32 regardless of
  the MXU's operand precision for f32 matmuls.
  """
  selb = jnp.broadcast_to(sel, (v.shape[0],) + sel.shape)        # (Do, W, K)
  v1 = v.astype(jnp.bfloat16).astype(jnp.float32)
  r = v - v1
  v2 = r.astype(jnp.bfloat16).astype(jnp.float32)
  v3 = r - v2
  out = None
  for piece in (v1, v2, v3):
    t = jnp.einsum('dhw,dwk->dhk', piece, selb,
                   preferred_element_type=jnp.float32)
    out = t if out is None else out + t
  return out


def _pooling_gate_kernel(x_ref, out_ref):
  # x_ref:   (D, Ho, 2, W)  one (n, c) slab; H pre-split into (Ho, even/odd) by a free
  #                         wrapper reshape so H taps need no sublane-strided access.
  # out_ref: (2, Do, Ho, Wo)  [0] = avg, [1] = max
  D, Ho, _, W = x_ref.shape
  Do = D // 2
  Wo = W // 2
  zero = jnp.float32(0.0)
  neg_inf = jnp.float32(-jnp.inf)

  # ---- H axis (k=3, s=2, p=1): even/odd taps come straight from the pre-split ref
  # (static index on the size-2 sublane dim); the h-1 tap is the odd plane shifted by
  # one Ho row.  Sum and max share the loaded taps.
  xe = x_ref[:, :, 0, :].astype(jnp.float32)            # x[:, 2ho,   :]  -> (D, Ho, W)
  xo = x_ref[:, :, 1, :].astype(jnp.float32)            # x[:, 2ho+1, :]
  hs = _shift_down(xo, 1, zero) + xe + xo               # 3-tap sum over H
  hm = jnp.maximum(jnp.maximum(_shift_down(xo, 1, neg_inf), xe), xo)

  # ---- D axis: leading-dim even/odd split (no sublane/lane relayout at all).
  def pool_d(v, op, pad_val):
    r = v.reshape(Do, 2, Ho, W)
    even, odd = r[:, 0], r[:, 1]
    prev = _shift_down(odd, 0, pad_val)
    return op(op(prev, even), odd)

  ds = pool_d(hs, jnp.add, zero)                        # (Do, Ho, W)
  dm = pool_d(hm, jnp.maximum, neg_inf)

  # ---- W axis (lane axis): window + stride-2 decimation as 0/1 selection matmuls.
  rw = lax.broadcasted_iota(jnp.int32, (W, Wo), 0)
  cw = 2 * lax.broadcasted_iota(jnp.int32, (W, Wo), 1)
  e_m1 = (rw == cw - 1).astype(jnp.float32)             # w == 2wo-1 (column 0 empty = pad)
  e_0 = (rw == cw).astype(jnp.float32)                  # w == 2wo
  e_p1 = (rw == cw + 1).astype(jnp.float32)             # w == 2wo+1

  # Sum: banded matrix sums the (<=3) in-bounds taps; zero padding matches
  # count_include_pad=True, so the divisor is always 27.
  avg = _select_lanes(ds, e_m1 + e_0 + e_p1) * jnp.float32(1.0 / 27.0)

  # Max: three exact selections, left pad column replaced by -inf after the matmuls.
  m_m1 = _select_lanes(dm, e_m1)
  wo_idx = lax.broadcasted_iota(jnp.int32, m_m1.shape, 2)
  m_m1 = jnp.where(wo_idx == 0, neg_inf, m_m1)
  mx = jnp.maximum(jnp.maximum(m_m1, _select_lanes(dm, e_0)), _select_lanes(dm, e_p1))

  out_ref[0] = avg.astype(out_ref.dtype)
  out_ref[1] = mx.astype(out_ref.dtype)


def pooling_gate(x, downsample=2):
  """x: (N, C, D, H, W) -> (N, 2C, D//2, H//2, W//2).  Matches PoolingGate(2)."""
  assert downsample == 2, "kernel specialized for downsample=2 (k=3, s=2, p=1)"
  N, C, D, H, W = x.shape
  assert D % 2 == 0 and H % 2 == 0 and W % 2 == 0, "even spatial dims assumed"
  Do, Ho, Wo = D // 2, H // 2, W // 2

  # Free (contiguous) reshape: split H into (Ho, even/odd).  No transpose, no copy.
  xr = x.reshape(N, C, D, Ho, 2, W)

  out_elems = N * 2 * C * Do * Ho * Wo
  itemsize = jnp.dtype(x.dtype).itemsize

  out = pl.pallas_call(
      _pooling_gate_kernel,
      out_shape=jax.ShapeDtypeStruct((N, 2, C, Do, Ho, Wo), x.dtype),
      grid=(N, C),
      in_specs=[
          pl.BlockSpec((None, None, D, Ho, 2, W),
                       lambda n, c: (n, c, 0, 0, 0, 0)),
      ],
      out_specs=pl.BlockSpec((None, 2, None, Do, Ho, Wo),
                             lambda n, c: (n, 0, c, 0, 0, 0)),
      compiler_params=pltpu.CompilerParams(
          dimension_semantics=("parallel", "parallel"),
          vmem_limit_bytes=32 * 1024 * 1024),
      cost_estimate=pl.CostEstimate(
          flops=27 * out_elems,
          transcendentals=0,
          bytes_accessed=int(x.size) * itemsize + out_elems * itemsize),
  )(xr)

  # (N, 2, C, Do, Ho, Wo) -> (N, 2C, Do, Ho, Wo) is a free reshape and reproduces
  # torch.cat([avg, max], dim=1) channel order exactly (avg channels, then max channels).
  return out.reshape(N, 2 * C, Do, Ho, Wo)


def _reference(x):
  """Pure-JAX reference matching PyTorch AvgPool3d/MaxPool3d defaults."""
  window = (1, 1, 3, 3, 3)
  strides = (1, 1, 2, 2, 2)
  pads = ((0, 0), (0, 0), (1, 1), (1, 1), (1, 1))
  s = lax.reduce_window(x, 0.0, lax.add, window, strides, pads)
  m = lax.reduce_window(x, -jnp.inf, lax.max, window, strides, pads)
  return jnp.concatenate([s / 27.0, m], axis=1)


if __name__ == "__main__":
  # PoolingGate has no learnable parameters; only pooling config (downsample=2).
  key = jax.random.PRNGKey(0)
  x = jax.random.normal(key, (2, 4, 8, 8, 8), dtype=jnp.float32)  # (N, C, D, H, W)

  y = jax.block_until_ready(pooling_gate(x, downsample=2))

  ref = _reference(x)
  assert y.shape == (2, 8, 4, 4, 4), y.shape
  np.testing.assert_allclose(np.asarray(y), np.asarray(ref), rtol=1e-5, atol=1e-5)
  print("KERNEL_OK")
</pallas_src>

<mosaic_0001>
module attributes {stable_mosaic.version = 11 : i64} {
  func.func @_pooling_gate_kernel(%arg0: i32, %arg1: i32, %arg2: memref<1x1x8x4x2x8xf32, #tpu.memory_space<vmem>>, %arg3: memref<1x2x1x4x4x4xf32, #tpu.memory_space<vmem>>) attributes {dimension_semantics = [#tpu.dimension_semantics<parallel>, #tpu.dimension_semantics<parallel>], iteration_bounds = array<i64: 2, 4>, scalar_prefetch = 0 : i64, scratch_operands = 0 : i64, tpu.core_type = #tpu.core_type<tc>, window_params = [{transform_indices = @transform_0, window_bounds = array<i64: 1, 1, 8, 4, 2, 8>}, {transform_indices = @transform_1, window_bounds = array<i64: 1, 2, 1, 4, 4, 4>}]} {
    %c0 = arith.constant 0 : index
    %c0_0 = arith.constant 0 : index
    %c0_1 = arith.constant 0 : index
    %c0_2 = arith.constant 0 : index
    %c0_3 = arith.constant 0 : index
    %c0_4 = arith.constant 0 : index
    %0 = vector.load %arg2[%c0, %c0_0, %c0_1, %c0_2, %c0_3, %c0_4] : memref<1x1x8x4x2x8xf32, #tpu.memory_space<vmem>>, vector<1x1x8x4x1x8xf32>
    %1 = vector.shape_cast %0 : vector<1x1x8x4x1x8xf32> to vector<8x4x8xf32>
    %c0_5 = arith.constant 0 : index
    %c0_6 = arith.constant 0 : index
    %c0_7 = arith.constant 0 : index
    %c0_8 = arith.constant 0 : index
    %c1 = arith.constant 1 : index
    %c0_9 = arith.constant 0 : index
    %2 = vector.load %arg2[%c0_5, %c0_6, %c0_7, %c0_8, %c1, %c0_9] : memref<1x1x8x4x2x8xf32, #tpu.memory_space<vmem>>, vector<1x1x8x4x1x8xf32>
    %3 = vector.shape_cast %2 : vector<1x1x8x4x1x8xf32> to vector<8x4x8xf32>
    %cst = arith.constant 0.000000e+00 : f32
    %4 = vector.broadcast %cst : f32 to vector<8x1x8xf32>
    %5 = vector.extract_strided_slice %3 {offsets = [0, 0, 0], sizes = [8, 3, 8], strides = [1, 1, 1]} : vector<8x4x8xf32> to vector<8x3x8xf32>
    %6 = tpu.concatenate %4, %5 in 1 : vector<8x1x8xf32>, vector<8x3x8xf32> -> vector<8x4x8xf32>
    %7 = arith.addf %6, %1 : vector<8x4x8xf32>
    %8 = arith.addf %7, %3 : vector<8x4x8xf32>
    %cst_10 = arith.constant 0xFF800000 : f32
    %9 = vector.broadcast %cst_10 : f32 to vector<8x1x8xf32>
    %10 = vector.extract_strided_slice %3 {offsets = [0, 0, 0], sizes = [8, 3, 8], strides = [1, 1, 1]} : vector<8x4x8xf32> to vector<8x3x8xf32>
    %11 = tpu.concatenate %9, %10 in 1 : vector<8x1x8xf32>, vector<8x3x8xf32> -> vector<8x4x8xf32>
    %12 = arith.maximumf %11, %1 : vector<8x4x8xf32>
    %13 = arith.maximumf %12, %3 : vector<8x4x8xf32>
    %14 = vector.shape_cast %8 : vector<8x4x8xf32> to vector<4x2x4x8xf32>
    %15 = vector.extract_strided_slice %14 {offsets = [0, 0, 0, 0], sizes = [4, 1, 4, 8], strides = [1, 1, 1, 1]} : vector<4x2x4x8xf32> to vector<4x1x4x8xf32>
    %16 = vector.shape_cast %15 : vector<4x1x4x8xf32> to vector<4x4x8xf32>
    %17 = vector.extract_strided_slice %14 {offsets = [0, 1, 0, 0], sizes = [4, 1, 4, 8], strides = [1, 1, 1, 1]} : vector<4x2x4x8xf32> to vector<4x1x4x8xf32>
    %18 = vector.shape_cast %17 : vector<4x1x4x8xf32> to vector<4x4x8xf32>
    %cst_11 = arith.constant 0.000000e+00 : f32
    %19 = vector.broadcast %cst_11 : f32 to vector<1x4x8xf32>
    %20 = vector.extract_strided_slice %18 {offsets = [0, 0, 0], sizes = [3, 4, 8], strides = [1, 1, 1]} : vector<4x4x8xf32> to vector<3x4x8xf32>
    %21 = tpu.concatenate %19, %20 in 0 : vector<1x4x8xf32>, vector<3x4x8xf32> -> vector<4x4x8xf32>
    %22 = arith.addf %21, %16 : vector<4x4x8xf32>
    %23 = arith.addf %22, %18 : vector<4x4x8xf32>
    %24 = vector.shape_cast %13 : vector<8x4x8xf32> to vector<4x2x4x8xf32>
    %25 = vector.extract_strided_slice %24 {offsets = [0, 0, 0, 0], sizes = [4, 1, 4, 8], strides = [1, 1, 1, 1]} : vector<4x2x4x8xf32> to vector<4x1x4x8xf32>
    %26 = vector.shape_cast %25 : vector<4x1x4x8xf32> to vector<4x4x8xf32>
    %27 = vector.extract_strided_slice %24 {offsets = [0, 1, 0, 0], sizes = [4, 1, 4, 8], strides = [1, 1, 1, 1]} : vector<4x2x4x8xf32> to vector<4x1x4x8xf32>
    %28 = vector.shape_cast %27 : vector<4x1x4x8xf32> to vector<4x4x8xf32>
    %cst_12 = arith.constant 0xFF800000 : f32
    %29 = vector.broadcast %cst_12 : f32 to vector<1x4x8xf32>
    %30 = vector.extract_strided_slice %28 {offsets = [0, 0, 0], sizes = [3, 4, 8], strides = [1, 1, 1]} : vector<4x4x8xf32> to vector<3x4x8xf32>
    %31 = tpu.concatenate %29, %30 in 0 : vector<1x4x8xf32>, vector<3x4x8xf32> -> vector<4x4x8xf32>
    %32 = arith.maximumf %31, %26 : vector<4x4x8xf32>
    %33 = arith.maximumf %32, %28 : vector<4x4x8xf32>
    %34 = tpu.iota {dimensions = array<i32: 0>} : vector<8x4xi32>
    %35 = tpu.iota {dimensions = array<i32: 1>} : vector<8x4xi32>
    %c2_i32 = arith.constant 2 : i32
    %36 = vector.broadcast %c2_i32 : i32 to vector<8x4xi32>
    %37 = arith.muli %36, %35 : vector<8x4xi32>
    %c1_i32 = arith.constant 1 : i32
    %38 = vector.broadcast %c1_i32 : i32 to vector<8x4xi32>
    %39 = arith.subi %37, %38 : vector<8x4xi32>
    %40 = arith.cmpi eq, %34, %39 : vector<8x4xi32>
    %41 = arith.extui %40 : vector<8x4xi1> to vector<8x4xi32>
    %42 = arith.sitofp %41 : vector<8x4xi32> to vector<8x4xf32>
    %43 = arith.cmpi eq, %34, %37 : vector<8x4xi32>
    %44 = arith.extui %43 : vector<8x4xi1> to vector<8x4xi32>
    %45 = arith.sitofp %44 : vector<8x4xi32> to vector<8x4xf32>
    %c1_i32_13 = arith.constant 1 : i32
    %46 = vector.broadcast %c1_i32_13 : i32 to vector<8x4xi32>
    %47 = arith.addi %37, %46 : vector<8x4xi32>
    %48 = arith.cmpi eq, %34, %47 : vector<8x4xi32>
    %49 = arith.extui %48 : vector<8x4xi1> to vector<8x4xi32>
    %50 = arith.sitofp %49 : vector<8x4xi32> to vector<8x4xf32>
    %51 = arith.addf %42, %45 : vector<8x4xf32>
    %52 = arith.addf %51, %50 : vector<8x4xf32>
    %53 = vector.shape_cast %52 : vector<8x4xf32> to vector<1x8x4xf32>
    %54 = vector.broadcast %53 : vector<1x8x4xf32> to vector<4x8x4xf32>
    %55 = arith.truncf %23 : vector<4x4x8xf32> to vector<4x4x8xbf16>
    %56 = arith.extf %55 : vector<4x4x8xbf16> to vector<4x4x8xf32>
    %57 = arith.subf %23, %56 : vector<4x4x8xf32>
    %58 = arith.truncf %57 : vector<4x4x8xf32> to vector<4x4x8xbf16>
    %59 = arith.extf %58 : vector<4x4x8xbf16> to vector<4x4x8xf32>
    %60 = arith.subf %57, %59 : vector<4x4x8xf32>
    "tpu.trace_start"() <{level = 10 : i32, message = "dhw,dwk->dhk"}> : () -> ()
    %cst_14 = arith.constant dense<0.000000e+00> : vector<4x4x4xf32>
    %61 = tpu.matmul %56, %54, %cst_14 {dimension_numbers = #tpu.dot_dimension_numbers<[2], [1], [1], [2], [0, 0, 0, 1, 1, 2], [0], [0]>} : vector<4x4x8xf32>, vector<4x8x4xf32>, vector<4x4x4xf32> -> vector<4x4x4xf32>
    %cst_15 = arith.constant dense<0.000000e+00> : vector<4x4x4xf32>
    %62 = tpu.matmul %59, %54, %cst_15 {dimension_numbers = #tpu.dot_dimension_numbers<[2], [1], [1], [2], [0, 0, 0, 1, 1, 2], [0], [0]>} : vector<4x4x8xf32>, vector<4x8x4xf32>, vector<4x4x4xf32> -> vector<4x4x4xf32>
    "tpu.trace_stop"() : () -> ()
    %63 = arith.addf %61, %62 : vector<4x4x4xf32>
    "tpu.trace_start"() <{level = 10 : i32, message = "dhw,dwk->dhk"}> : () -> ()
    %cst_16 = arith.constant dense<0.000000e+00> : vector<4x4x4xf32>
    %64 = tpu.matmul %60, %54, %cst_16 {dimension_numbers = #tpu.dot_dimension_numbers<[2], [1], [1], [2], [0, 0, 0, 1, 1, 2], [0], [0]>} : vector<4x4x8xf32>, vector<4x8x4xf32>, vector<4x4x4xf32> -> vector<4x4x4xf32>
    "tpu.trace_stop"() : () -> ()
    %65 = arith.addf %63, %64 : vector<4x4x4xf32>
    %cst_17 = arith.constant 0.0370370373 : f32
    %66 = vector.broadcast %cst_17 : f32 to vector<4x4x4xf32>
    %67 = arith.mulf %65, %66 : vector<4x4x4xf32>
    %68 = vector.shape_cast %42 : vector<8x4xf32> to vector<1x8x4xf32>
    %69 = vector.broadcast %68 : vector<1x8x4xf32> to vector<4x8x4xf32>
    %70 = arith.truncf %33 : vector<4x4x8xf32> to vector<4x4x8xbf16>
    %71 = arith.extf %70 : vector<4x4x8xbf16> to vector<4x4x8xf32>
    %72 = arith.subf %33, %71 : vector<4x4x8xf32>
    %73 = arith.truncf %72 : vector<4x4x8xf32> to vector<4x4x8xbf16>
    %74 = arith.extf %73 : vector<4x4x8xbf16> to vector<4x4x8xf32>
    %75 = arith.subf %72, %74 : vector<4x4x8xf32>
    "tpu.trace_start"() <{level = 10 : i32, message = "dhw,dwk->dhk"}> : () -> ()
    %cst_18 = arith.constant dense<0.000000e+00> : vector<4x4x4xf32>
    %76 = tpu.matmul %71, %69, %cst_18 {dimension_numbers = #tpu.dot_dimension_numbers<[2], [1], [1], [2], [0, 0, 0, 1, 1, 2], [0], [0]>} : vector<4x4x8xf32>, vector<4x8x4xf32>, vector<4x4x4xf32> -> vector<4x4x4xf32>
    %cst_19 = arith.constant dense<0.000000e+00> : vector<4x4x4xf32>
    %77 = tpu.matmul %74, %69, %cst_19 {dimension_numbers = #tpu.dot_dimension_numbers<[2], [1], [1], [2], [0, 0, 0, 1, 1, 2], [0], [0]>} : vector<4x4x8xf32>, vector<4x8x4xf32>, vector<4x4x4xf32> -> vector<4x4x4xf32>
    "tpu.trace_stop"() : () -> ()
    %78 = arith.addf %76, %77 : vector<4x4x4xf32>
    "tpu.trace_start"() <{level = 10 : i32, message = "dhw,dwk->dhk"}> : () -> ()
    %cst_20 = arith.constant dense<0.000000e+00> : vector<4x4x4xf32>
    %79 = tpu.matmul %75, %69, %cst_20 {dimension_numbers = #tpu.dot_dimension_numbers<[2], [1], [1], [2], [0, 0, 0, 1, 1, 2], [0], [0]>} : vector<4x4x8xf32>, vector<4x8x4xf32>, vector<4x4x4xf32> -> vector<4x4x4xf32>
    "tpu.trace_stop"() : () -> ()
    %80 = arith.addf %78, %79 : vector<4x4x4xf32>
    %81 = tpu.iota {dimensions = array<i32: 2>} : vector<4x4x4xi32>
    %c0_i32 = arith.constant 0 : i32
    %82 = vector.broadcast %c0_i32 : i32 to vector<4x4x4xi32>
    %83 = arith.cmpi eq, %81, %82 : vector<4x4x4xi32>
    %cst_21 = arith.constant 0xFF800000 : f32
    %84 = vector.broadcast %cst_21 : f32 to vector<4x4x4xf32>
    %85 = arith.select %83, %84, %80 : vector<4x4x4xi1>, vector<4x4x4xf32>
    %86 = vector.shape_cast %45 : vector<8x4xf32> to vector<1x8x4xf32>
    %87 = vector.broadcast %86 : vector<1x8x4xf32> to vector<4x8x4xf32>
    %88 = arith.truncf %33 : vector<4x4x8xf32> to vector<4x4x8xbf16>
    %89 = arith.extf %88 : vector<4x4x8xbf16> to vector<4x4x8xf32>
    %90 = arith.subf %33, %89 : vector<4x4x8xf32>
    %91 = arith.truncf %90 : vector<4x4x8xf32> to vector<4x4x8xbf16>
    %92 = arith.extf %91 : vector<4x4x8xbf16> to vector<4x4x8xf32>
    %93 = arith.subf %90, %92 : vector<4x4x8xf32>
    "tpu.trace_start"() <{level = 10 : i32, message = "dhw,dwk->dhk"}> : () -> ()
    %cst_22 = arith.constant dense<0.000000e+00> : vector<4x4x4xf32>
    %94 = tpu.matmul %89, %87, %cst_22 {dimension_numbers = #tpu.dot_dimension_numbers<[2], [1], [1], [2], [0, 0, 0, 1, 1, 2], [0], [0]>} : vector<4x4x8xf32>, vector<4x8x4xf32>, vector<4x4x4xf32> -> vector<4x4x4xf32>
    %cst_23 = arith.constant dense<0.000000e+00> : vector<4x4x4xf32>
    %95 = tpu.matmul %92, %87, %cst_23 {dimension_numbers = #tpu.dot_dimension_numbers<[2], [1], [1], [2], [0, 0, 0, 1, 1, 2], [0], [0]>} : vector<4x4x8xf32>, vector<4x8x4xf32>, vector<4x4x4xf32> -> vector<4x4x4xf32>
    "tpu.trace_stop"() : () -> ()
    %96 = arith.addf %94, %95 : vector<4x4x4xf32>
    "tpu.trace_start"() <{level = 10 : i32, message = "dhw,dwk->dhk"}> : () -> ()
    %cst_24 = arith.constant dense<0.000000e+00> : vector<4x4x4xf32>
    %97 = tpu.matmul %93, %87, %cst_24 {dimension_numbers = #tpu.dot_dimension_numbers<[2], [1], [1], [2], [0, 0, 0, 1, 1, 2], [0], [0]>} : vector<4x4x8xf32>, vector<4x8x4xf32>, vector<4x4x4xf32> -> vector<4x4x4xf32>
    "tpu.trace_stop"() : () -> ()
    %98 = arith.addf %96, %97 : vector<4x4x4xf32>
    %99 = arith.maximumf %85, %98 : vector<4x4x4xf32>
    %100 = vector.shape_cast %50 : vector<8x4xf32> to vector<1x8x4xf32>
    %101 = vector.broadcast %100 : vector<1x8x4xf32> to vector<4x8x4xf32>
    %102 = arith.truncf %33 : vector<4x4x8xf32> to vector<4x4x8xbf16>
    %103 = arith.extf %102 : vector<4x4x8xbf16> to vector<4x4x8xf32>
    %104 = arith.subf %33, %103 : vector<4x4x8xf32>
    %105 = arith.truncf %104 : vector<4x4x8xf32> to vector<4x4x8xbf16>
    %106 = arith.extf %105 : vector<4x4x8xbf16> to vector<4x4x8xf32>
    %107 = arith.subf %104, %106 : vector<4x4x8xf32>
    "tpu.trace_start"() <{level = 10 : i32, message = "dhw,dwk->dhk"}> : () -> ()
    %cst_25 = arith.constant dense<0.000000e+00> : vector<4x4x4xf32>
    %108 = tpu.matmul %103, %101, %cst_25 {dimension_numbers = #tpu.dot_dimension_numbers<[2], [1], [1], [2], [0, 0, 0, 1, 1, 2], [0], [0]>} : vector<4x4x8xf32>, vector<4x8x4xf32>, vector<4x4x4xf32> -> vector<4x4x4xf32>
    %cst_26 = arith.constant dense<0.000000e+00> : vector<4x4x4xf32>
    %109 = tpu.matmul %106, %101, %cst_26 {dimension_numbers = #tpu.dot_dimension_numbers<[2], [1], [1], [2], [0, 0, 0, 1, 1, 2], [0], [0]>} : vector<4x4x8xf32>, vector<4x8x4xf32>, vector<4x4x4xf32> -> vector<4x4x4xf32>
    "tpu.trace_stop"() : () -> ()
    %110 = arith.addf %108, %109 : vector<4x4x4xf32>
    "tpu.trace_start"() <{level = 10 : i32, message = "dhw,dwk->dhk"}> : () -> ()
    %cst_27 = arith.constant dense<0.000000e+00> : vector<4x4x4xf32>
    %111 = tpu.matmul %107, %101, %cst_27 {dimension_numbers = #tpu.dot_dimension_numbers<[2], [1], [1], [2], [0, 0, 0, 1, 1, 2], [0], [0]>} : vector<4x4x8xf32>, vector<4x8x4xf32>, vector<4x4x4xf32> -> vector<4x4x4xf32>
    "tpu.trace_stop"() : () -> ()
    %112 = arith.addf %110, %111 : vector<4x4x4xf32>
    %113 = arith.maximumf %99, %112 : vector<4x4x4xf32>
    %c0_28 = arith.constant 0 : index
    %c0_29 = arith.constant 0 : index
    %c0_30 = arith.constant 0 : index
    %c0_31 = arith.constant 0 : index
    %c0_32 = arith.constant 0 : index
    %c0_33 = arith.constant 0 : index
    %114 = vector.load %arg3[%c0_28, %c0_29, %c0_30, %c0_31, %c0_32, %c0_33] : memref<1x2x1x4x4x4xf32, #tpu.memory_space<vmem>>, vector<1x1x1x4x4x4xf32>
    %115 = vector.shape_cast %114 : vector<1x1x1x4x4x4xf32> to vector<4x4x4xf32>
    %116 = vector.shape_cast %67 : vector<4x4x4xf32> to vector<1x1x1x4x4x4xf32>
    tpu.vector_store %arg3[%c0_28, %c0_29, %c0_30, %c0_31, %c0_32, %c0_33], %116 {strides = array<i32>} : memref<1x2x1x4x4x4xf32, #tpu.memory_space<vmem>>, vector<1x1x1x4x4x4xf32>,
    %c0_34 = arith.constant 0 : index
    %c1_35 = arith.constant 1 : index
    %c0_36 = arith.constant 0 : index
    %c0_37 = arith.constant 0 : index
    %c0_38 = arith.constant 0 : index
    %c0_39 = arith.constant 0 : index
    %117 = vector.load %arg3[%c0_34, %c1_35, %c0_36, %c0_37, %c0_38, %c0_39] : memref<1x2x1x4x4x4xf32, #tpu.memory_space<vmem>>, vector<1x1x1x4x4x4xf32>
    %118 = vector.shape_cast %117 : vector<1x1x1x4x4x4xf32> to vector<4x4x4xf32>
    %119 = vector.shape_cast %113 : vector<4x4x4xf32> to vector<1x1x1x4x4x4xf32>
    tpu.vector_store %arg3[%c0_34, %c1_35, %c0_36, %c0_37, %c0_38, %c0_39], %119 {strides = array<i32>} : memref<1x2x1x4x4x4xf32, #tpu.memory_space<vmem>>, vector<1x1x1x4x4x4xf32>,
    return
  }
  func.func @transform_0(%arg0: i32, %arg1: i32) -> (i32, i32, i32, i32, i32, i32) {
    %c0_i32 = arith.constant 0 : i32
    %c0_i32_0 = arith.constant 0 : i32
    %c0_i32_1 = arith.constant 0 : i32
    %c0_i32_2 = arith.constant 0 : i32
    %c0_i32_3 = arith.constant 0 : i32
    return %arg0, %arg1, %c0_i32, %c0_i32_0, %c0_i32_1, %c0_i32_2 : i32, i32, i32, i32, i32, i32
  }
  func.func @transform_1(%arg0: i32, %arg1: i32) -> (i32, i32, i32, i32, i32, i32) {
    %c0_i32 = arith.constant 0 : i32
    %c0_i32_0 = arith.constant 0 : i32
    %c0_i32_1 = arith.constant 0 : i32
    %c0_i32_2 = arith.constant 0 : i32
    %c0_i32_3 = arith.constant 0 : i32
    return %arg0, %c0_i32, %arg1, %c0_i32_0, %c0_i32_1, %c0_i32_2 : i32, i32, i32, i32, i32, i32
  }
}

</mosaic_0001>

<bundles_post_ra>
// kernel: tpu_custom_call.1
= control target key start
LH: loop header
LB: loop body
LE: loop exit
PB: predicated region body
PF: predicated region fallthrough
CT: control target
= control target key end

     0   :  { %6 = vsyncpa [#allocation3], 0  ;;  %s2785_s0 = inlined_call_operand.hbm [shape: f32[2,4,8,4,2,8], index: 0, kind: input, shape index: {}]   ;;  %s2786_s1 = inlined_call_operand.hbm [shape: f32[2,2,4,4,4,4], index: 1, kind: output, shape index: {}]  }
   0x1   :  { %8 = vsyncpa [#allocation3 + $0x1], 0 }
   0x2   :  { %9 = vsyncpa [#allocation4], 0 }
   0x3   :  { %11 = vsyncpa [#allocation4 + $0x1], 0  ;;  %s2108_s6 = smov 0   ;;  %s2110_s7 = smov 0  }
   0x4   :  { %s2112_s8 = smov 0   ;;  %s2114_s9 = smov 0  }
   0x5   :  { %s2116_s10 = smov 0   ;;  %s2118_s11 = smov 0  }
   0x6   :  { %s2120_s12 = smov 0   ;;  %s2122_s13 = smov 0  }
   0x7 LB: > { %s1783_s14 = sadd.s32 4294967295, %s2086_s13   ;;  %s1784_s15 = sadd.s32 4294967294, %s2086_s13   ;;  %s2086_s13 = sphi %s2122_s13, %s17_s13   ;;  %s2082_s12 = sphi %s2120_s12, %s2806_s12   ;;  %s2078_s11 = sphi %s2118_s11, %s2805_s11   ;;  %s2074_s10 = sphi %s2116_s10, %s2804_s10   ;;  %s2070_s9 = sphi %s2114_s9, %s2803_s9   ;;  %s2066_s8 = sphi %s2112_s8, %s2802_s8   ;;  %s2062_s7 = sphi %s2110_s7, %s2801_s7   ;;  %s2058_s6 = sphi %s2108_s6, %s2800_s6  }
   0x8   : > { %s26_s16 = sadd.s32 1, %s2078_s11  ;;  %s29_s17 = sadd.s32 1, %s2082_s12 }
   0x9   : > { %p27_p0 = scmp.ge.s32.totalorder %s26_s16, 4  ;;  %s38_s18 = sadd.s32 1, %s2066_s8 }
   0xa   : > { %p45_p1 = scmp.ne.s32.totalorder %s2066_s8, %s2062_s7  ;;  %p46_p2 = scmp.eq.s32.totalorder %s2086_s13, 0 }
   0xb   : > { %s2808_s16 = smov (%p27_p0, %s26_s16), 0  ;;  %s2810_s17 = smov (!%p27_p0, %s29_s17), %s2082_s12 }
   0xc   : > { %s34_s19 = ssub.s32 %s2078_s11, %s2808_s16  ;;  %p2161_p3 = por %p46_p2, %p45_p1 }
   0xd   : > { %p31_p4 = scmp.ge.s32.totalorder %s2810_s17, 2  ;;  %p51_p5 = scmp.ne.s32.totalorder %s2062_s7, %s2058_s6 }
   0xe   : > { %p52_p6 = scmp.eq.s32.totalorder %s1783_s14, 0  ;;  %p77_p7 = scmp.eq.s32.totalorder %s1783_s14, 7 }
   0xf   : > { %s2812_s17 = smov (%p31_p4, %s2810_s17), 0  ;;  %p83_p10 = scmp.eq.s32.totalorder %s1784_s15, 7 }
  0x10   : > { %2789 = sst [smem:[#allocation10_spill]] %s2812_s17  ;;  %p2169_p8 = por %p52_p6, %p51_p5 }
  0x11   : > { %p2173_p9 = por %p77_p7, %p45_p1  ;;  %s33_s23 = ssub.s32 %s2082_s12, %s2812_s17 }
  0x12   : > { %s35_s24 = sor.u32 %s34_s19, %s33_s23  ;;  %p2179_p12 = por %p83_p10, %p51_p5 }
  0x13   : > { %p36_p11 = scmp.eq.s32.totalorder %s35_s24, 0  ;;  %p1910_p13 = scmp.lt.s32.totalorder %s2086_s13, 8 }
  0x14   : > { %s103_s26 = sand.u32 1, %s2066_s8   ;;  %s1788_s29 = sshll.u32 %s2078_s11, 5 }
  0x15   : > { %s2186_s27 = scalar_select %p36_p11, %s2066_s8, %s38_s18  }
  0x16   : > { %s1787_s28 = sshll.u32 %s103_s26, 6  ;;  %s1789_s30 = sshll.u32 %s2082_s12, 7 }
  0x17   : > { %s107_s2 = scalar_lea.vmem [#allocation2], %s1787_s28  ;;  %s112_s4 = sadd.s32 %s1789_s30, %s1788_s29 }
  0x18   : > { %s117_s3 = sshll.u32 %s107_s2, 4  ;;  %s1790_s5 = sshll.u32 %s112_s4, 1  ;;  %s118_s3 = int_to_ptr.vmem [resolvable:$true] %s117_s3 }
  0x19   : > { %p1903_p0 = pnand %p1910_p13, %p2161_p3  ;;  %s114_s19 = scalar_lea.hbm %s2785_s0, %s1790_s5 }
  0x1a   : > { %s115_s23 = sshll.u32 %s114_s19, 4  ;;  %s104_s18 = scalar_lea.sflag [#allocation3], %s103_s26  ;;  %s116_s23 = int_to_ptr.hbm [resolvable:$true] %s115_s23 }
  0x1b   : > { %s2088_s24 = smov 32   ;;  %s2089_s17 = smov 2  }
  0x1c   : > { %1905 = dma.hbm_to_vmem [thread:$0]  (!%p1903_p0), %s116_s23, 1024, %s118_s3, %s104_s18, %s2088_s24, %s2088_s24, %s2089_s17  }
  0x1d   : > { %p1791_p1 = scmp.ge.s32.totalorder %s2086_s13, 1  ;;  %p125_p2 = scmp.lt.s32.totalorder %s2086_s13, 9 }
  0x1f   : > { %p126_p4 = pnand %p1791_p1, %p125_p2 }
  0x20   : > { %s2198_s28 = sand.u32 (!%p126_p4), 1, %s2062_s7  }
  0x21   : > { %129 = sbr.rel (%p126_p4) target bundleno = 350 (0x15e), region = 24  ;;  %s1792_s20 = sshll.u32 (!%p126_p4), %s2198_s28, 6 }
  0x22   : > { %s132_s29 = scalar_lea.sflag (!%p126_p4), [#allocation3], %s2198_s28  ;;  %s2202_s30 = scalar_lea.vmem (!%p126_p4), [#allocation2], %s1792_s20 }
  0x26   : > { %2049 = dma.done.wait (%p2169_p8), %s132_s29, 1024  }
  0x27   : > { %2051 = vsyncadd (%p2169_p8), %s132_s29, 4294966272  ;;  %v510_v0 = vlaneseq  ;;  %v2090_v7 = vmov 0.0   ;;  %vm245_vm1 = vcmask 1042434   ;;  %vm248_vm2 = vcmask 1043459   ;;  %v156_v13 = vld [vmem:[%s2202_s30 + $0x2] sm:$0x1] }
  0x28   : > { %vm293_vm5 = vcmask 1040384   ;;  %vm335_vm6 = vcmask 1041409   ;;  %v157_v14 = vld [vmem:[%s2202_s30 + $0x4] sm:$0x1]  ;;  %v158_v16 = vld [vmem:[%s2202_s30 + $0x6] sm:$0x1] }
  0x29   : > { %v511_v1 = vshrl.u32 %v510_v0, 7  ;;  %v2208_v2 = vand.u32 127, %v510_v0  ;;  %v187_v17 = vld [vmem:[%s2202_s30 + $0x1] sm:$0x1]  ;;  %v188_v18 = vld [vmem:[%s2202_s30 + $0x3] sm:$0x1] }
  0x2a   : > { %v155_v19 = vld [vmem:[%s2202_s30] sm:$0x1]  ;;  %v160_v20 = vld [vmem:[%s2202_s30 + $0xa] sm:$0x1]  ;;  %v189_v21 = vld [vmem:[%s2202_s30 + $0x5] sm:$0x1] }
  0x2b   : > { %v514_v3 = vmul.u32 2, %v2208_v2  ;;  %v191_v22 = vld [vmem:[%s2202_s30 + $0x9] sm:$0x1]  ;;  %v161_v24 = vld [vmem:[%s2202_s30 + $0xc] sm:$0x1]  ;;  %v243_v28 = vrot.slane %v187_v17, 7 }
  0x2c   : > { %v192_v25 = vld [vmem:[%s2202_s30 + $0xb] sm:$0x1]  ;;  %v193_v26 = vld [vmem:[%s2202_s30 + $0xd] sm:$0x1]  ;;  %v162_v27 = vld [vmem:[%s2202_s30 + $0xe] sm:$0x1] }
  0x2d   : > { %v1794_v4 = vadd.s32 4294967295, %v514_v3  ;;  %vm2211_vm0 = vcmp.eq.s32.totalorder %v511_v1, %v514_v3  ;;  %v522_v6 = vadd.s32 1, %v514_v3  ;;  %v244_v29 = vrot.slane %v188_v18, 6  ;;  %v159_v32 = vld [vmem:[%s2202_s30 + $0x8] sm:$0x1]  ;;  %s1793_s17 = sshll.u32 %s2198_s28, 5 }
  0x2e   : > { %v1796_v8 = vsel %vm2211_vm0, 1.0, %v2090_v7  ;;  %v247_v30 = vrot.slane %v189_v21, 5  ;;  %v250_v31 = vrot.slane %v191_v22, 7  ;;  %v251_v33 = vrot.slane %v192_v25, 6  ;;  %v190_v41 = vld [vmem:[%s2202_s30 + $0x7] sm:$0x1] }
  0x2f   : > { %vm2217_vm3 = vcmp.eq.s32.totalorder %v511_v1, %v1794_v4  ;;  %vm2221_vm4 = vcmp.eq.s32.totalorder %v511_v1, %v522_v6  ;;  %v253_v34 = vrot.slane %v193_v26, 5  ;;  %v334_v35 = vrot.slane %v156_v13, 7  ;;  %v194_v50 = vld [vmem:[%s2202_s30 + $0xf] sm:$0x1]  ;;  %v2269_v62 = vld [vmem:[%s2202_s30 + $0x11] sm:$0x1] }
  0x30   : > { %v1795_v11 = vsel %vm2217_vm3, 1.0, %v2090_v7  ;;  %v1797_v12 = vsel %vm2221_vm4, 1.0, %v2090_v7  ;;  %v337_v36 = vrot.slane %v157_v14, 6  ;;  %v246_v37 = vsel %vm245_vm1, %v244_v29, %v243_v28  ;;  %v2272_v63 = vld [vmem:[%s2202_s30 + $0x13] sm:$0x1]  ;;  %s2709_s21 = scalar_lea.vmem [#allocation5], %s1793_s17 }
  0x31   : > { %v526_v15 = vadd.f32 %v1796_v8, %v1795_v11  ;;  %v339_v38 = vrot.slane %v158_v16, 5  ;;  %v341_v39 = vrot.slane %v160_v20, 7  ;;  %v343_v40 = vrot.slane %v161_v24, 6  ;;  %v2277_v6 = vld [vmem:[%s2202_s30 + $0x15] sm:$0x1]  ;;  %s1653_s26 = scalar_lea.sflag [#allocation4], %s2198_s28 }
  0x32   : > { %v249_v42 = vsel %vm248_vm2, %v247_v30, %v246_v37  ;;  %v252_v43 = vsel %vm245_vm1, %v251_v33, %v250_v31  ;;  %v336_v44 = vsel %vm335_vm6, %v334_v35, %v155_v19  ;;  %v345_v45 = vrot.slane %v162_v27, 5  ;;  %v199_v7 = vld [vmem:[%s2202_s30 + $0x19] sm:$0x1]  ;;  %v164_v13 = vld [vmem:[%s2202_s30 + $0x12] sm:$0x1] }
  0x33   : > { %v2238_v23 = vadd.f32 %v1797_v12, %v526_v15  ;;  %v254_v46 = vsel %vm248_vm2, %v253_v34, %v252_v43  ;;  %v294_v47 = vsel %vm293_vm5, 0.0, %v249_v42  ;;  %v338_v48 = vsel %vm245_vm1, %v337_v36, %v336_v44  ;;  %v200_v14 = vld [vmem:[%s2202_s30 + $0x1b] sm:$0x1]  ;;  %v166_v29 = vld [vmem:[%s2202_s30 + $0x16] sm:$0x1] }
  0x34   : > { %v342_v49 = vsel %vm335_vm6, %v341_v39, %v159_v32  ;;  %v295_v51 = vsel %vm293_vm5, 0.0, %v254_v46  ;;  %v340_v52 = vsel %vm248_vm2, %v339_v38, %v338_v48  ;;  %v407_v54 = vrot.slane %v188_v18, 7  ;;  %v201_v18 = vld [vmem:[%s2202_s30 + $0x1d] sm:$0x1]  ;;  %v168_v30 = vld [vmem:[%s2202_s30 + $0x1a] sm:$0x1] }
  0x35   : > { %571 = vmatpush.msra.mxu0 %v2238_v23  ;;  %594 = vmatpush.msra.mxu1 %v2238_v23  ;;  %v344_v53 = vsel %vm245_vm1, %v343_v40, %v342_v49  ;;  %v391_v56 = vadd.f32 %v340_v52, %v294_v47  ;;  %v409_v57 = vrot.slane %v189_v21, 6  ;;  %v411_v58 = vrot.slane %v190_v41, 5  ;;  %v167_v33 = vld [vmem:[%s2202_s30 + $0x18] sm:$0x1]  ;;  %v169_v39 = vld [vmem:[%s2202_s30 + $0x1c] sm:$0x1] }
  0x36   : > { %617 = vmatpush.msra.mxu2 %v2238_v23  ;;  %640 = vmatpush.msra.mxu3 %v2238_v23  ;;  %v346_v55 = vsel %vm248_vm2, %v345_v45, %v344_v53  ;;  %v408_v59 = vsel %vm335_vm6, %v407_v54, %v187_v17  ;;  %v413_v60 = vrot.slane %v192_v25, 7  ;;  %v415_v61 = vrot.slane %v193_v26, 6  ;;  %v165_v17 = vld [vmem:[%s2202_s30 + $0x14] sm:$0x1]  ;;  %v170_v40 = vld [vmem:[%s2202_s30 + $0x1e] sm:$0x1] }
  0x37   : > { %663 = vmatpush.msrb.mxu0 %v2238_v23  ;;  %686 = vmatpush.msrb.mxu1 %v2238_v23  ;;  %v392_v0 = vadd.f32 %v346_v55, %v295_v51  ;;  %v410_v1 = vsel %vm245_vm1, %v409_v57, %v408_v59  ;;  %v417_v3 = vrot.slane %v194_v50, 5  ;;  %v471_v4 = vsel %vm293_vm5, -inf, %v249_v42  ;;  %v198_v50 = vld [vmem:[%s2202_s30 + $0x17] sm:$0x1]  ;;  %v202_v57 = vld [vmem:[%s2202_s30 + $0x1f] sm:$0x1] }
  0x38   : > { %709 = vmatpush.msrb.mxu2 %v2238_v23  ;;  %732 = vmatpush.msrb.mxu3 %v2238_v23  ;;  %v412_v8 = vsel %vm248_vm2, %v411_v58, %v410_v1  ;;  %v414_v11 = vsel %vm335_vm6, %v413_v60, %v191_v22  ;;  %v472_v12 = vsel %vm293_vm5, -inf, %v254_v46  ;;  %v255_v19 = vrot.slane %v2269_v62, 7  ;;  %v163_v22 = vld [vmem:[%s2202_s30 + $0x10] sm:$0x1] }
  0x39   : > { %v416_v15 = vsel %vm245_vm1, %v415_v61, %v414_v11  ;;  %v463_v16 = vadd.f32 %v412_v8, %v391_v56  ;;  %v256_v20 = vrot.slane %v2272_v63, 6  ;;  %v479_v24 = vmax.f32 %v471_v4, %v340_v52 }
  0x3a   : > { %v418_v21 = vsel %vm248_vm2, %v417_v3, %v416_v15  ;;  %v258_v25 = vrot.slane %v2277_v6, 5  ;;  %v260_v26 = vrot.slane %v199_v7, 7  ;;  %v480_v28 = vmax.f32 %v472_v12, %v346_v55 }
  0x3b   : > { %v2293_v27 = vadd.f32 %v418_v21, %v392_v0  ;;  %v257_v31 = vsel %vm245_vm1, %v256_v20, %v255_v19  ;;  %v261_v32 = vrot.slane %v200_v14, 6  ;;  %v263_v35 = vrot.slane %v201_v18, 5  ;;  %v2341_v20 = vld [vmem:[%s2202_s30 + $0x25] sm:$0x1] }
  0x3c   : > { %v259_v34 = vsel %vm248_vm2, %v258_v25, %v257_v31  ;;  %v347_v36 = vrot.slane %v164_v13, 7  ;;  %v349_v37 = vrot.slane %v165_v17, 6  ;;  %v351_v45 = vrot.slane %v166_v29, 5  ;;  %v2351_v25 = vld [vmem:[%s2202_s30 + $0x2b] sm:$0x1] }
  0x3d   : > { %v499_v38 = vadd.f32 %v2293_v27, %v463_v16  ;;  %v262_v41 = vsel %vm245_vm1, %v261_v32, %v260_v26  ;;  %v296_v42 = vsel %vm293_vm5, 0.0, %v259_v34  ;;  %v353_v46 = vrot.slane %v168_v30, 7  ;;  %v2332_v16 = vld [vmem:[%s2202_s30 + $0x21] sm:$0x1]  ;;  %v2358_v30 = vld [vmem:[%s2202_s30 + $0x2d] sm:$0x1] }
  0x3e   : > { %v264_v43 = vsel %vm248_vm2, %v263_v35, %v262_v41  ;;  %v348_v44 = vsel %vm335_vm6, %v347_v36, %v163_v22  ;;  %v487_v47 = vmax.f32 %v479_v24, %v412_v8  ;;  %v2307_v48 = vmax.f32 %v480_v28, %v418_v21  ;;  %v2348_v22 = vld [vmem:[%s2202_s30 + $0x29] sm:$0x1]  ;;  %v173_v35 = vld [vmem:[%s2202_s30 + $0x24] sm:$0x1] }
  0x3f   : > { %v528_v49 = vpack.c.bf16 %v499_v38, %v499_v38  ;;  %v350_v51 = vsel %vm245_vm1, %v349_v37, %v348_v44  ;;  %v354_v53 = vsel %vm335_vm6, %v353_v46, %v167_v33  ;;  %v355_v54 = vrot.slane %v169_v39, 6  ;;  %v177_v46 = vld [vmem:[%s2202_s30 + $0x2c] sm:$0x1] }
  0x40   : > { %v2312_v52 = vsel %vm248_vm2, %v351_v45, %v350_v51  ;;  %v357_v55 = vrot.slane %v170_v40, 5  ;;  %v297_v58 = vsel %vm293_vm5, 0.0, %v264_v43  ;;  %v419_v60 = vrot.slane %v2272_v63, 7 }
  0x41   : > { %v2315_v56 = vunpack.c.l.bf16 %v528_v49  ;;  %v393_v59 = vadd.f32 %v2312_v52, %v296_v42  ;;  %v356_v61 = vsel %vm245_vm1, %v355_v54, %v354_v53  ;;  %v421_v0 = vrot.slane %v2277_v6, 6 }
  0x42   : > { %v423_v1 = vrot.slane %v198_v50, 5  ;;  %v425_v3 = vrot.slane %v200_v14, 7  ;;  %v358_v8 = vsel %vm248_vm2, %v357_v55, %v356_v61  ;;  %v420_v11 = vsel %vm335_vm6, %v419_v60, %v2269_v62  ;;  %v175_v55 = vld [vmem:[%s2202_s30 + $0x28] sm:$0x1] }
  0x43   : > { %v2324_v4 = vsub.f32 %v499_v38, %v2315_v56  ;;  %v427_v12 = vrot.slane %v201_v18, 6  ;;  %v394_v13 = vadd.f32 %v358_v8, %v297_v58  ;;  %v422_v63 = vsel %vm245_vm1, %v421_v0, %v420_v11  ;;  %v204_v18 = vld [vmem:[%s2202_s30 + $0x23] sm:$0x1]  ;;  %v171_v38 = vld [vmem:[%s2202_s30 + $0x20] sm:$0x1] }
  0x44   : > { %v426_v6 = vsel %vm335_vm6, %v425_v3, %v199_v7  ;;  %v429_v15 = vrot.slane %v202_v57, 5  ;;  %v424_v17 = vsel %vm248_vm2, %v423_v1, %v422_v63  ;;  %v473_v62 = vsel %vm293_vm5, -inf, %v259_v34  ;;  %v172_v34 = vld [vmem:[%s2202_s30 + $0x22] sm:$0x1]  ;;  %v178_v57 = vld [vmem:[%s2202_s30 + $0x2e] sm:$0x1] }
  0x45   : > { %v540_v14 = vpack.c.bf16 %v2324_v4, %v2324_v4  ;;  %v428_v19 = vsel %vm245_vm1, %v427_v12, %v426_v6  ;;  %v2344_v7 = vmax.f32 %v487_v47, %v2307_v48  ;;  %vm552_vm7 = vcmask 64512  }
  0x46   : > { %v430_v21 = vsel %vm248_vm2, %v429_v15, %v428_v19  ;;  %v465_v24 = vadd.f32 %v424_v17, %v393_v59  ;;  %v474_v28 = vsel %vm293_vm5, -inf, %v264_v43  ;;  %v481_v29 = vmax.f32 %v473_v62, %v2312_v52  ;;  %v176_v43 = vld [vmem:[%s2202_s30 + $0x2a] sm:$0x1] }
  0x47   : > { %v2353_v26 = vunpack.c.l.bf16 %v540_v14  ;;  %v265_v31 = vrot.slane %v2332_v16, 7  ;;  %v2361_v32 = vadd.f32 %v430_v21, %v394_v13  ;;  %v266_v36 = vrot.slane %v204_v18, 6 }
  0x48   : > { %v496_v33 = vadd.f32 %v465_v24, %v2293_v27  ;;  %v268_v37 = vrot.slane %v2341_v20, 5  ;;  %v270_v39 = vrot.slane %v2348_v22, 7  ;;  %v271_v40 = vrot.slane %v2351_v25, 6  ;;  %v174_v27 = vld [vmem:[%s2202_s30 + $0x26] sm:$0x1] }
  0x49   : > { %1798 = vmatmul.msk.f32.vlgmr.msra.gmra.mxu0 %vm552_vm7, %v2353_v26  ;;  %v482_v41 = vmax.f32 %v474_v28, %v358_v8  ;;  %v267_v44 = vsel %vm245_vm1, %v266_v36, %v265_v31  ;;  %v273_v45 = vrot.slane %v2358_v30, 5  ;;  %v359_v50 = vrot.slane %v172_v34, 7  ;;  %v206_v8 = vld [vmem:[%s2202_s30 + $0x27] sm:$0x1]  ;;  %v2416_v36 = vld [vmem:[%s2202_s30 + $0x31] sm:$0x1] }
  0x4a   : > { %v500_v42 = vadd.f32 %v496_v33, %v2361_v32  ;;  %755 = vmatpush.msra.mxu0 %v2238_v23  ;;  %v269_v47 = vsel %vm248_vm2, %v268_v37, %v267_v44  ;;  %v272_v49 = vsel %vm245_vm1, %v271_v40, %v270_v39  ;;  %v361_v51 = vrot.slane %v173_v35, 6  ;;  %v2430_v40 = vld [vmem:[%s2202_s30 + $0x35] sm:$0x1]  ;;  %v2439_v44 = vld [vmem:[%s2202_s30 + $0x3b] sm:$0x1] }
  0x4b   : > { %v837_v52 = vpack.c.bf16 %v2344_v7, %v2344_v7  ;;  %v489_v53 = vmax.f32 %v481_v29, %v424_v17  ;;  %v274_v58 = vsel %vm248_vm2, %v273_v45, %v272_v49  ;;  %v298_v59 = vsel %vm293_vm5, 0.0, %v269_v47  ;;  %v210_v17 = vld [vmem:[%s2202_s30 + $0x2f] sm:$0x1] }
  0x4c   : > { %v529_v54 = vpack.c.bf16 %v500_v42, %v500_v42  ;;  %v360_v60 = vsel %vm335_vm6, %v359_v50, %v171_v38  ;;  %v363_v61 = vrot.slane %v174_v27, 5  ;;  %v365_v0 = vrot.slane %v176_v43, 7  ;;  %v2422_v38 = vld [vmem:[%s2202_s30 + $0x33] sm:$0x1]  ;;  %v2436_v43 = vld [vmem:[%s2202_s30 + $0x39] sm:$0x1] }
  0x4d   : > { %v2388_v1 = vmax.f32 %v482_v41, %v430_v21  ;;  %v362_v11 = vsel %vm245_vm1, %v361_v51, %v360_v60  ;;  %v367_v12 = vrot.slane %v177_v46, 6  ;;  %v369_v6 = vrot.slane %v178_v57, 5  ;;  %v179_v57 = vld [vmem:[%s2202_s30 + $0x30] sm:$0x1] }
  0x4e   : > { %v2390_v3 = vunpack.c.l.bf16 %v529_v54  ;;  %v364_v13 = vsel %vm248_vm2, %v363_v61, %v362_v11  ;;  %v366_v63 = vsel %vm335_vm6, %v365_v0, %v175_v55  ;;  %v431_v15 = vrot.slane %v204_v18, 7 }
  0x4f   : > { %v299_v19 = vsel %vm293_vm5, 0.0, %v274_v58  ;;  %v368_v62 = vsel %vm245_vm1, %v367_v12, %v366_v63  ;;  %v395_v21 = vadd.f32 %v364_v13, %v298_v59  ;;  %v433_v29 = vrot.slane %v2341_v20, 6  ;;  %v182_v59 = vld [vmem:[%s2202_s30 + $0x36] sm:$0x1]  ;;  %v185_v63 = vld [vmem:[%s2202_s30 + $0x3c] sm:$0x1] }
  0x50   : > { %v2397_v14 = vsub.f32 %v500_v42, %v2390_v3  ;;  %v2403_v24 = vsel %vm248_vm2, %v369_v6, %v368_v62  ;;  %v432_v28 = vsel %vm335_vm6, %v431_v15, %v2332_v16  ;;  %v435_v31 = vrot.slane %v206_v8, 5  ;;  %v186_v6 = vld [vmem:[%s2202_s30 + $0x3e] sm:$0x1] }
  0x51   : > { %1802 = vmatmul.msk.f32.vlgmr.msrb.gmra.mxu0 %vm552_vm7, %v2315_v56  ;;  %v503_v18 = vmax.f32 %v2307_v48, %v489_v53  ;;  %v437_v34 = vrot.slane %v2351_v25, 7  ;;  %v439_v35 = vrot.slane %v2358_v30, 6  ;;  %v396_v16 = vadd.f32 %v2403_v24, %v299_v19  ;;  %v181_v53 = vld [vmem:[%s2202_s30 + $0x34] sm:$0x1] }
  0x52   : > { %v541_v33 = vpack.c.bf16 %v2397_v14, %v2397_v14  ;;  %v434_v20 = vsel %vm245_vm1, %v433_v29, %v432_v28  ;;  %v441_v37 = vrot.slane %v210_v17, 5  ;;  %v475_v56 = vsel %vm293_vm5, -inf, %v269_v47  ;;  %v2454_v47 = vld [vmem:[%s2202_s30 + $0x3d] sm:$0x1] }
  0x53   : > { %v436_v25 = vsel %vm248_vm2, %v435_v31, %v434_v20  ;;  %v438_v30 = vsel %vm335_vm6, %v437_v34, %v2348_v22  ;;  %v483_v39 = vmax.f32 %v475_v56, %v364_v13  ;;  %v548_v41 = vsub.f32 %v2324_v4, %v2353_v26  ;;  %v180_v26 = vld [vmem:[%s2202_s30 + $0x32] sm:$0x1]  ;;  %v214_v34 = vld [vmem:[%s2202_s30 + $0x37] sm:$0x1] }
  0x54   : > { %v2424_v48 = vunpack.c.l.bf16 %v541_v33  ;;  %v440_v42 = vsel %vm245_vm1, %v439_v35, %v438_v30  ;;  %v467_v27 = vadd.f32 %v436_v25, %v395_v21  ;;  %v275_v45 = vrot.slane %v2416_v36, 7  ;;  %v183_v21 = vld [vmem:[%s2202_s30 + $0x38] sm:$0x1]  ;;  %v218_v30 = vld [vmem:[%s2202_s30 + $0x3f] sm:$0x1] }
  0x55   : > { %v2442_v46 = vunpack.c.l.bf16 %v837_v52  ;;  %v2445_v22 = vmax.f32 %v503_v18, %v2388_v1  ;;  %v2450_v4 = vsel %vm248_vm2, %v441_v37, %v440_v42  ;;  %v276_v49 = vrot.slane %v2422_v38, 6 }
  0x56   : > { %1799 = vmatmul.msk.f32.vlgmr.msra.gmra.mxu1 %vm552_vm7, %v2424_v48  ;;  %v2458_v50 = vadd.f32 %v2450_v4, %v396_v16  ;;  %v476_v51 = vsel %vm293_vm5, -inf, %v274_v58  ;;  %v497_v52 = vadd.f32 %v467_v27, %v2361_v32  ;;  %v278_v54 = vrot.slane %v2430_v40, 5  ;;  %v184_v32 = vld [vmem:[%s2202_s30 + $0x3a] sm:$0x1] }
  0x57   : > { %778 = vmatpush.msra.mxu1 %v2238_v23  ;;  %v491_v55 = vmax.f32 %v483_v39, %v436_v25  ;;  %v277_v60 = vsel %vm245_vm1, %v276_v49, %v275_v45  ;;  %v280_v61 = vrot.slane %v2436_v43, 7  ;;  %v281_v0 = vrot.slane %v2439_v44, 6 }
  0x58   : > { %v501_v58 = vadd.f32 %v497_v52, %v2458_v50  ;;  %v279_v8 = vsel %vm248_vm2, %v278_v54, %v277_v60  ;;  %v283_v11 = vrot.slane %v2454_v47, 5  ;;  %v371_v12 = vrot.slane %v180_v26, 7 }
  0x59   : > { %1806 = vmatmul.msk.f32.vlgmr.msra.gmra.mxu0 %vm552_vm7, %v548_v41  ;;  %v838_v13 = vpack.c.bf16 %v2445_v22, %v2445_v22  ;;  %v282_v15 = vsel %vm245_vm1, %v281_v0, %v280_v61  ;;  %v300_v17 = vsel %vm293_vm5, 0.0, %v279_v8  ;;  %v373_v19 = vrot.slane %v181_v53, 6 }
  0x5a   : > { %v530_v62 = vpack.c.bf16 %v501_v58, %v501_v58  ;;  %v284_v28 = vsel %vm248_vm2, %v283_v11, %v282_v15  ;;  %v372_v29 = vsel %vm335_vm6, %v371_v12, %v179_v57  ;;  %v375_v31 = vrot.slane %v182_v59, 5 }
  0x5b   : > { %v484_v18 = vmax.f32 %v476_v51, %v2403_v24  ;;  %v504_v33 = vmax.f32 %v2388_v1, %v491_v55  ;;  %v374_v35 = vsel %vm245_vm1, %v373_v19, %v372_v29  ;;  %v377_v16 = vrot.slane %v184_v32, 7 }
  0x5c   : > { %v534_v20 = vunpack.c.l.bf16 %v530_v62  ;;  %v376_v37 = vsel %vm248_vm2, %v375_v31, %v374_v35  ;;  %v379_v56 = vrot.slane %v185_v63, 6  ;;  %v381_v25 = vrot.slane %v186_v6, 5 }
  0x5d   : > { %v301_v39 = vsel %vm293_vm5, 0.0, %v284_v28  ;;  %v378_v41 = vsel %vm335_vm6, %v377_v16, %v183_v21  ;;  %v397_v42 = vadd.f32 %v376_v37, %v300_v17  ;;  %v443_v27 = vrot.slane %v2422_v38, 7 }
  0x5e   : > { %1803 = vmatmul.msk.f32.vlgmr.msrb.gmra.mxu1 %vm552_vm7, %v2390_v3  ;;  %v2495_v1 = vsub.f32 %v501_v58, %v534_v20  ;;  %v380_v24 = vsel %vm245_vm1, %v379_v56, %v378_v41  ;;  %v445_v45 = vrot.slane %v2430_v40, 6  ;;  %v447_v26 = vrot.slane %v214_v34, 5 }
  0x5f   : > { %v382_v49 = vsel %vm248_vm2, %v381_v25, %v380_v24  ;;  %v444_v51 = vsel %vm335_vm6, %v443_v27, %v2416_v36  ;;  %v449_v52 = vrot.slane %v2439_v44, 7  ;;  %v451_v53 = vrot.slane %v2454_v47, 6 }
  0x60   : > { %v542_v38 = vpack.c.bf16 %v2495_v1, %v2495_v1  ;;  %v398_v3 = vadd.f32 %v382_v49, %v301_v39  ;;  %v446_v54 = vsel %vm245_vm1, %v445_v45, %v444_v51  ;;  %v453_v55 = vrot.slane %v218_v30, 5 }
  0x61   : > { %v549_v40 = vsub.f32 %v2397_v14, %v2424_v48  ;;  %v2509_v57 = vunpack.c.l.bf16 %v838_v13  ;;  %v448_v59 = vsel %vm248_vm2, %v447_v26, %v446_v54  ;;  %v450_v36 = vsel %vm335_vm6, %v449_v52, %v2436_v43 }
  0x62   : > { %v492_v44 = vmax.f32 %v484_v18, %v2450_v4  ;;  %v546_v47 = vunpack.c.l.bf16 %v542_v38  ;;  %v452_v60 = vsel %vm245_vm1, %v451_v53, %v450_v36  ;;  %v469_v61 = vadd.f32 %v448_v59, %v397_v42 }
  0x63   : > { %v454_v0 = vsel %vm248_vm2, %v453_v55, %v452_v60  ;;  %v477_v58 = vsel %vm293_vm5, -inf, %v279_v8  ;;  %v845_v14 = vsub.f32 %v2344_v7, %v2442_v46  ;;  %v846_v4 = vsub.f32 %v2445_v22, %v2509_v57 }
  0x64   : > { %v508_v48 = vmax.f32 %v504_v33, %v492_v44  ;;  %1800 = vmatmul.msk.f32.vlgmr.msra.gmra.mxu2 %vm552_vm7, %v546_v47  ;;  %v470_v32 = vadd.f32 %v454_v0, %v398_v3  ;;  %v498_v11 = vadd.f32 %v469_v61, %v2458_v50  ;;  %v485_v12 = vmax.f32 %v477_v58, %v376_v37 }
  0x65   : > { %801 = vmatpush.msra.mxu2 %v2238_v23  ;;  %v849_v43 = vpack.c.bf16 %v845_v14, %v845_v14  ;;  %v2091_v8 = vmov 1.0   ;;  %v478_v7 = vsel %vm293_vm5, -inf, %v284_v28  ;;  %v850_v63 = vpack.c.bf16 %v846_v4, %v846_v4 }
  0x66   : > { %1807 = vmatmul.msk.f32.vlgmr.msra.gmra.mxu1 %vm552_vm7, %v549_v40  ;;  %v502_v13 = vadd.f32 %v498_v11, %v470_v32  ;;  %1810 = vmatpush.msk.msrb.mxu0 %vm2217_vm3, %v2091_v8  ;;  %v839_v22 = vpack.c.bf16 %v508_v48, %v508_v48  ;;  %v486_v17 = vmax.f32 %v478_v7, %v382_v49  ;;  %vm1642_vm8 = vcmask 27648  }
  0x67   : > { %1812 = vmatpush.msk.msrb.mxu1 %vm2217_vm3, %v2091_v8  ;;  %v2533_v50 = vunpack.c.l.bf16 %v849_v43  ;;  %v2543_v15 = vunpack.c.l.bf16 %v850_v63  ;;  %v493_v19 = vmax.f32 %v485_v12, %v448_v59  ;;  %v550_v33 = vsub.f32 %v2495_v1, %v546_v47 }
  0x68   : > { %1818 = vmatpush.msk.msra.mxu0 %vm2217_vm3, %v2091_v8  ;;  %v531_v6 = vpack.c.bf16 %v502_v13, %v502_v13  ;;  %v2548_v21 = vunpack.c.l.bf16 %v839_v22  ;;  %v494_v29 = vmax.f32 %v486_v17, %v454_v0  ;;  %vm1141_vm9 = vcmp.eq.s32.totalorder %v2208_v2, 0 }
  0x69   : > { %1820 = vmatpush.msk.msra.mxu1 %vm2217_vm3, %v2091_v8  ;;  %1811 = vmatmul.msk.f32.vlgmr.msrb.gmra.mxu0 %vm552_vm7, %v2533_v50  ;;  %v505_v31 = vmax.f32 %v492_v44, %v493_v19  ;;  %v857_v37 = vsub.f32 %v845_v14, %v2533_v50 }
  0x6a   : > { %v535_v62 = vunpack.c.l.bf16 %v531_v6  ;;  %1826 = vmatpush.msk.msrb.mxu0 %vm2217_vm3, %v2091_v8  ;;  %v847_v35 = vsub.f32 %v508_v48, %v2548_v21 }
  0x6b   : > { %v509_v16 = vmax.f32 %v505_v31, %v494_v29 }
  0x6c   : > { %v539_v28 = vsub.f32 %v502_v13, %v535_v62  ;;  %1804 = vmatmul.msk.f32.vlgmr.msrb.gmra.mxu2 %vm552_vm7, %v534_v20  ;;  %v851_v20 = vpack.c.bf16 %v847_v35, %v847_v35 }
  0x6d   : > { %1814 = vmatpush.msk.msrb.mxu2 %vm2217_vm3, %v2091_v8  ;;  %v840_v56 = vpack.c.bf16 %v509_v16, %v509_v16 }
  0x6e   : > { %1813 = vmatmul.msk.f32.vlgmr.msrb.gmra.mxu1 %vm552_vm7, %v2543_v15  ;;  %v543_v18 = vpack.c.bf16 %v539_v28, %v539_v28  ;;  %v855_v25 = vunpack.c.l.bf16 %v851_v20 }
  0x6f   : > { %1828 = vmatpush.msk.msrb.mxu1 %vm2217_vm3, %v2091_v8  ;;  %v2580_v30 = vunpack.c.l.bf16 %v840_v56 }
  0x70   : > { %v547_v34 = vunpack.c.l.bf16 %v543_v18  ;;  %v859_v1 = vsub.f32 %v847_v35, %v855_v25 }
  0x71   : > { %1819 = vmatmul.msk.f32.vlgmr.msra.gmra.mxu0 %vm552_vm7, %v2442_v46  ;;  %v848_v41 = vsub.f32 %v509_v16, %v2580_v30 }
  0x72   : > { %1801 = vmatmul.msk.f32.vlgmr.msra.gmra.mxu3 %vm552_vm7, %v547_v34  ;;  %1834 = vmatpush.msk.msra.mxu0 %vm2211_vm0, %v2091_v8  ;;  %v551_v39 = vsub.f32 %v539_v28, %v547_v34 }
  0x73   : > { %824 = vmatpush.msra.mxu3 %v2238_v23  ;;  %v858_v23 = vsub.f32 %v846_v4, %v2543_v15  ;;  %v852_v42 = vpack.c.bf16 %v848_v41, %v848_v41 }
  0x74   : > { %1808 = vmatmul.msk.f32.vlgmr.msra.gmra.mxu2 %vm552_vm7, %v550_v33 }
  0x75   : > { %1822 = vmatpush.msk.msra.mxu2 %vm2217_vm3, %v2091_v8  ;;  %v856_v27 = vunpack.c.l.bf16 %v852_v42 }
  0x76   : > { %1821 = vmatmul.msk.f32.vlgmr.msra.gmra.mxu1 %vm552_vm7, %v2509_v57 }
  0x77   : > { %1836 = vmatpush.msk.msra.mxu1 %vm2211_vm0, %v2091_v8  ;;  %v860_v9 = vsub.f32 %v848_v41, %v856_v27 }
  0x79   : > { %1827 = vmatmul.msk.f32.vlgmr.msrb.gmra.mxu0 %vm552_vm7, %v857_v37 }
  0x7a   : > { %1805 = vmatmul.msk.f32.vlgmr.msrb.gmra.mxu3 %vm552_vm7, %v535_v62  ;;  %1842 = vmatpush.msk.msrb.mxu0 %vm2211_vm0, %v2091_v8 }
  0x7b   : > { %1816 = vmatpush.msk.msrb.mxu3 %vm2217_vm3, %v2091_v8 }
  0x7c   : > { %1815 = vmatmul.msk.f32.vlgmr.msrb.gmra.mxu2 %vm552_vm7, %v855_v25 }
  0x7d   : > { %1830 = vmatpush.msk.msrb.mxu2 %vm2217_vm3, %v2091_v8 }
  0x7e   : > { %1829 = vmatmul.msk.f32.vlgmr.msrb.gmra.mxu1 %vm552_vm7, %v858_v23 }
  0x7f   : > { %1844 = vmatpush.msk.msrb.mxu1 %vm2211_vm0, %v2091_v8 }
  0x81   : > { %1835 = vmatmul.msk.f32.vlgmr.msra.gmra.mxu0 %vm552_vm7, %v2533_v50 }
  0x82   : > { %1809 = vmatmul.msk.f32.vlgmr.msra.gmra.mxu3 %vm552_vm7, %v551_v39  ;;  %1850 = vmatpush.msk.msra.mxu0 %vm2211_vm0, %v2091_v8 }
  0x83   : > { %1824 = vmatpush.msk.msra.mxu3 %vm2217_vm3, %v2091_v8 }
  0x84   : > { %1823 = vmatmul.msk.f32.vlgmr.msra.gmra.mxu2 %vm552_vm7, %v2548_v21 }
  0x85   : > { %1838 = vmatpush.msk.msra.mxu2 %vm2211_vm0, %v2091_v8 }
  0x86   : > { %1837 = vmatmul.msk.f32.vlgmr.msra.gmra.mxu1 %vm552_vm7, %v2543_v15 }
  0x87   : > { %1852 = vmatpush.msk.msra.mxu1 %vm2211_vm0, %v2091_v8 }
  0x89   : > { %1843 = vmatmul.msk.f32.vlgmr.msrb.gmra.mxu0 %vm552_vm7, %v2442_v46 }
  0x8a   : > { %1817 = vmatmul.msk.f32.vlgmr.msrb.gmra.mxu3 %vm552_vm7, %v856_v27  ;;  %1858 = vmatpush.msk.msrb.mxu0 %vm2221_vm4, %v2091_v8 }
  0x8b   : > { %1832 = vmatpush.msk.msrb.mxu3 %vm2217_vm3, %v2091_v8 }
  0x8c   : > { %1831 = vmatmul.msk.f32.vlgmr.msrb.gmra.mxu2 %vm552_vm7, %v859_v1 }
  0x8d   : > { %1846 = vmatpush.msk.msrb.mxu2 %vm2211_vm0, %v2091_v8 }
  0x8e   : > { %1845 = vmatmul.msk.f32.vlgmr.msrb.gmra.mxu1 %vm552_vm7, %v2509_v57 }
  0x8f   : > { %1860 = vmatpush.msk.msrb.mxu1 %vm2221_vm4, %v2091_v8 }
  0x91   : > { %1851 = vmatmul.msk.f32.vlgmr.msra.gmra.mxu0 %vm552_vm7, %v857_v37 }
  0x92   : > { %1825 = vmatmul.msk.f32.vlgmr.msra.gmra.mxu3 %vm552_vm7, %v2580_v30  ;;  %1866 = vmatpush.msk.msra.mxu0 %vm2221_vm4, %v2091_v8 }
  0x93   : > { %1840 = vmatpush.msk.msra.mxu3 %vm2211_vm0, %v2091_v8 }
  0x94   : > { %1839 = vmatmul.msk.f32.vlgmr.msra.gmra.mxu2 %vm552_vm7, %v855_v25 }
  0x95   : > { %1854 = vmatpush.msk.msra.mxu2 %vm2211_vm0, %v2091_v8 }
  0x96   : > { %1853 = vmatmul.msk.f32.vlgmr.msra.gmra.mxu1 %vm552_vm7, %v858_v23 }
  0x97   : > { %1868 = vmatpush.msk.msra.mxu1 %vm2221_vm4, %v2091_v8 }
  0x99   : > { %1859 = vmatmul.msk.f32.vlgmr.msrb.gmra.mxu0 %vm552_vm7, %v2533_v50 }
  0x9a   : > { %1833 = vmatmul.msk.f32.vlgmr.msrb.gmra.mxu3 %vm552_vm7, %v860_v9  ;;  %1874 = vmatpush.msk.msrb.mxu0 %vm2221_vm4, %v2091_v8 }
  0x9b   : > { %1848 = vmatpush.msk.msrb.mxu3 %vm2211_vm0, %v2091_v8 }
  0x9c   : > { %1847 = vmatmul.msk.f32.vlgmr.msrb.gmra.mxu2 %vm552_vm7, %v2548_v21 }
  0x9d   : > { %1862 = vmatpush.msk.msrb.mxu2 %vm2221_vm4, %v2091_v8 }
  0x9e   : > { %1861 = vmatmul.msk.f32.vlgmr.msrb.gmra.mxu1 %vm552_vm7, %v2543_v15 }
  0x9f   : > { %1876 = vmatpush.msk.msrb.mxu1 %vm2221_vm4, %v2091_v8 }
  0xa1   : > { %1867 = vmatmul.msk.f32.vlgmr.msra.gmra.mxu0 %vm552_vm7, %v2442_v46 }
  0xa2   : > { %1841 = vmatmul.msk.f32.vlgmr.msra.gmra.mxu3 %vm552_vm7, %v856_v27 }
  0xa3   : > { %1856 = vmatpush.msk.msra.mxu3 %vm2211_vm0, %v2091_v8 }
  0xa4   : > { %1855 = vmatmul.msk.f32.vlgmr.msra.gmra.mxu2 %vm552_vm7, %v859_v1 }
  0xa5   : > { %1870 = vmatpush.msk.msra.mxu2 %vm2221_vm4, %v2091_v8 }
  0xa6   : > { %1869 = vmatmul.msk.f32.vlgmr.msra.gmra.mxu1 %vm552_vm7, %v2509_v57 }
  0xa9   : > { %1875 = vmatmul.msk.f32.vlgmr.msrb.gmra.mxu0 %vm552_vm7, %v857_v37 }
  0xaa   : > { %1849 = vmatmul.msk.f32.vlgmr.msrb.gmra.mxu3 %vm552_vm7, %v2580_v30 }
  0xab   : > { %1864 = vmatpush.msk.msrb.mxu3 %vm2221_vm4, %v2091_v8 }
  0xac   : > { %1863 = vmatmul.msk.f32.vlgmr.msrb.gmra.mxu2 %vm552_vm7, %v855_v25 }
  0xad   : > { %1878 = vmatpush.msk.msrb.mxu2 %vm2221_vm4, %v2091_v8 }
  0xae   : > { %1877 = vmatmul.msk.f32.vlgmr.msrb.gmra.mxu1 %vm552_vm7, %v858_v23 }
  0xb2   : > { %1857 = vmatmul.msk.f32.vlgmr.msra.gmra.mxu3 %vm552_vm7, %v860_v9 }
  0xb3   : > { %1872 = vmatpush.msk.msra.mxu3 %vm2221_vm4, %v2091_v8 }
  0xb4   : > { %1871 = vmatmul.msk.f32.vlgmr.msra.gmra.mxu2 %vm552_vm7, %v2548_v21 }
  0xba   : > { %1865 = vmatmul.msk.f32.vlgmr.msrb.gmra.mxu3 %vm552_vm7, %v856_v27 }
  0xbb   : > { %1880 = vmatpush.msk.msrb.mxu3 %vm2221_vm4, %v2091_v8 }
  0xbc   : > { %1879 = vmatmul.msk.f32.vlgmr.msrb.gmra.mxu2 %vm552_vm7, %v859_v1 }
  0xc2   : > { %1873 = vmatmul.msk.f32.vlgmr.msra.gmra.mxu3 %vm552_vm7, %v2580_v30 }
  0xc6   : > { %v573_v5 = vpop.f32.mrf.mxu0 }
  0xca   : > { %1881 = vmatmul.msk.f32.vlgmr.msrb.gmra.mxu3 %vm552_vm7, %v860_v9 }
  0xce   : > { %v665_v24 = vpop.f32.mrf.mxu0 }
  0xcf   : > { %v666_v26 = vadd.f32 %v665_v24, %v573_v5 }
  0xd3   : > { %v596_v46 = vpop.f32.mrf.mxu1 }
  0xd6   : > { %v757_v49 = vpop.f32.mrf.mxu0 }
  0xd7   : > { %v829_v51 = vadd.f32 %v757_v49, %v666_v26 }
  0xd9   : > { %v833_v52 = vmul.f32 0.037037037, %v829_v51 }
  0xdb   : > { %v688_v45 = vpop.f32.mrf.mxu1  ;;  %1643 = vst.msk [vmem:[%s2709_s21] sm:$0xf] %vm1642_vm8, %v833_v52 }
  0xdc   : > { %v689_v53 = vadd.f32 %v688_v45, %v596_v46 }
  0xe3   : > { %v780_v10 = vpop.f32.mrf.mxu1 }
  0xe4   : > { %v830_v38 = vadd.f32 %v780_v10, %v689_v53 }
  0xe6   : > { %v834_v3 = vmul.f32 0.037037037, %v830_v38  ;;  %v881_v54 = vpop.f32.mrf.mxu0 }
  0xe7   : > { %v619_v55 = vpop.f32.mrf.mxu2 }
  0xe8   : > { %1644 = vst.msk [vmem:[%s2709_s21 + $0x4] sm:$0xf] %vm1642_vm8, %v834_v3 }
  0xeb   : > { %v904_v40 = vpop.f32.mrf.mxu1 }
  0xee   : > { %v973_v57 = vpop.f32.mrf.mxu0 }
  0xef   : > { %v711_v59 = vpop.f32.mrf.mxu2  ;;  %v974_v33 = vadd.f32 %v973_v57, %v881_v54 }
  0xf0   : > { %v712_v47 = vadd.f32 %v711_v59, %v619_v55 }
  0xf3   : > { %v996_v36 = vpop.f32.mrf.mxu1 }
  0xf4   : > { %v997_v37 = vadd.f32 %v996_v36, %v904_v40 }
  0xf5   : > { %v642_v44 = vpop.f32.mrf.mxu3 }
  0xf6   : > { %v1065_v60 = vpop.f32.mrf.mxu0 }
  0xf7   : > { %v803_v61 = vpop.f32.mrf.mxu2  ;;  %v1137_v35 = vadd.f32 %v1065_v60, %v974_v33 }
  0xf8   : > { %v831_v0 = vadd.f32 %v803_v61, %v712_v47 }
  0xf9   : > { %v1142_v30 = vsel %vm1141_vm9, -inf, %v1137_v35 }
  0xfa   : > { %v835_v58 = vmul.f32 0.037037037, %v831_v0 }
  0xfb   : > { %v1088_v14 = vpop.f32.mrf.mxu1 }
  0xfc   : > { %1645 = vst.msk [vmem:[%s2709_s21 + $0x8] sm:$0xf] %vm1642_vm8, %v835_v58  ;;  %v1138_v39 = vadd.f32 %v1088_v14, %v997_v37 }
  0xfd   : > { %v734_v48 = vpop.f32.mrf.mxu3 }
  0xfe   : > { %v1163_v32 = vpop.f32.mrf.mxu0  ;;  %v735_v4 = vadd.f32 %v734_v48, %v642_v44  ;;  %v1143_v24 = vsel %vm1141_vm9, -inf, %v1138_v39 }
  0xff   : > { %v927_v11 = vpop.f32.mrf.mxu2 }
 0x103   : > { %v1183_v43 = vpop.f32.mrf.mxu1 }
 0x105   : > { %v826_v12 = vpop.f32.mrf.mxu3 }
 0x106   : > { %v832_v13 = vadd.f32 %v826_v12, %v735_v4  ;;  %v1243_v8 = vpop.f32.mrf.mxu0 }
 0x107   : > { %v1019_v7 = vpop.f32.mrf.mxu2  ;;  %v1244_v34 = vadd.f32 %v1243_v8, %v1163_v32 }
 0x108   : > { %v836_v50 = vmul.f32 0.037037037, %v832_v13  ;;  %v1020_v3 = vadd.f32 %v1019_v7, %v927_v11 }
 0x10a   : > { %1646 = vst.msk [vmem:[%s2709_s21 + $0xc] sm:$0xf] %vm1642_vm8, %v836_v50 }
 0x10b   : > { %v1263_v63 = vpop.f32.mrf.mxu1 }
 0x10c   : > { %v1264_v25 = vadd.f32 %v1263_v63, %v1183_v43 }
 0x10d   : > { %v950_v22 = vpop.f32.mrf.mxu3 }
 0x10e   : > { %v1323_v6 = vpop.f32.mrf.mxu0 }
 0x10f   : > { %v1111_v15 = vpop.f32.mrf.mxu2  ;;  %v1386_v20 = vadd.f32 %v1323_v6, %v1244_v34 }
 0x110   : > { %v1139_v55 = vadd.f32 %v1111_v15, %v1020_v3 }
 0x111   : > { %v1390_v42 = vmax.f32 %v1142_v30, %v1386_v20 }
 0x112   : > { %v1144_v36 = vsel %vm1141_vm9, -inf, %v1139_v55 }
 0x113   : > { %v1343_v17 = vpop.f32.mrf.mxu1 }
 0x114   : > { %v1387_v27 = vadd.f32 %v1343_v17, %v1264_v25 }
 0x115   : > { %v1042_v19 = vpop.f32.mrf.mxu3 }
 0x116   : > { %v1411_v62 = vpop.f32.mrf.mxu0  ;;  %v1391_v26 = vmax.f32 %v1143_v24, %v1387_v27  ;;  %v1043_v58 = vadd.f32 %v1042_v19, %v950_v22 }
 0x117   : > { %v1203_v21 = vpop.f32.mrf.mxu2 }
 0x11b   : > { %v1431_v28 = vpop.f32.mrf.mxu1 }
 0x11d   : > { %v1134_v29 = vpop.f32.mrf.mxu3 }
 0x11e   : > { %v1491_v31 = vpop.f32.mrf.mxu0  ;;  %v1140_v48 = vadd.f32 %v1134_v29, %v1043_v58 }
 0x11f   : > { %v1283_v18 = vpop.f32.mrf.mxu2  ;;  %v1492_v23 = vadd.f32 %v1491_v31, %v1411_v62 }
 0x120   : > { %v1284_v54 = vadd.f32 %v1283_v18, %v1203_v21  ;;  %v1145_v43 = vsel %vm1141_vm9, -inf, %v1140_v48 }
 0x123   : > { %v1511_v16 = vpop.f32.mrf.mxu1 }
 0x124   : > { %v1512_v5 = vadd.f32 %v1511_v16, %v1431_v28 }
 0x125   : > { %v1223_v56 = vpop.f32.mrf.mxu3 }
 0x126   : > { %v1571_v41 = vpop.f32.mrf.mxu0 }
 0x127   : > { %v1363_v1 = vpop.f32.mrf.mxu2  ;;  %v1634_v9 = vadd.f32 %v1571_v41, %v1492_v23 }
 0x128   : > { %v1388_v40 = vadd.f32 %v1363_v1, %v1284_v54 }
 0x129   : > { %v1638_v46 = vmax.f32 %v1390_v42, %v1634_v9 }
 0x12a   : > { %v1392_v47 = vmax.f32 %v1144_v36, %v1388_v40 }
 0x12b   : > { %v1591_v45 = vpop.f32.mrf.mxu1  ;;  %1882 = vst.msk [vmem:[%s2709_s21 + $0x10] sm:$0xf] %vm1642_vm8, %v1638_v46 }
 0x12c   : > { %v1635_v49 = vadd.f32 %v1591_v45, %v1512_v5 }
 0x12d   : > { %v1303_v51 = vpop.f32.mrf.mxu3 }
 0x12e   : > { %v1639_v52 = vmax.f32 %v1391_v26, %v1635_v49  ;;  %v1304_v14 = vadd.f32 %v1303_v51, %v1223_v56 }
 0x12f   : > { %v1451_v53 = vpop.f32.mrf.mxu2 }
 0x130   : > { %1883 = vst.msk [vmem:[%s2709_s21 + $0x14] sm:$0xf] %vm1642_vm8, %v1639_v52 }
 0x135   : > { %v1383_v10 = vpop.f32.mrf.mxu3 }
 0x136   : > { %v1389_v32 = vadd.f32 %v1383_v10, %v1304_v14 }
 0x137   : > { %v1531_v38 = vpop.f32.mrf.mxu2 }
 0x138   : > { %v1532_v59 = vadd.f32 %v1531_v38, %v1451_v53  ;;  %v1393_v12 = vmax.f32 %v1145_v43, %v1389_v32 }
 0x13d   : > { %v1471_v57 = vpop.f32.mrf.mxu3 }
 0x13f   : > { %v1611_v44 = vpop.f32.mrf.mxu2 }
 0x140   : > { %v1636_v60 = vadd.f32 %v1611_v44, %v1532_v59 }
 0x142   : > { %v1640_v61 = vmax.f32 %v1392_v47, %v1636_v60 }
 0x144   : > { %1884 = vst.msk [vmem:[%s2709_s21 + $0x18] sm:$0xf] %vm1642_vm8, %v1640_v61 }
 0x145   : > { %v1551_v0 = vpop.f32.mrf.mxu3 }
 0x146   : > { %v1552_v11 = vadd.f32 %v1551_v0, %v1471_v57 }
 0x14d   : > { %v1631_v4 = vpop.f32.mrf.mxu3 }
 0x14e   : > { %v1637_v13 = vadd.f32 %v1631_v4, %v1552_v11 }
 0x150   : > { %v1641_v8 = vmax.f32 %v1393_v12, %v1637_v13 }
 0x152   : > { %1885 = vst.msk [vmem:[%s2709_s21 + $0x1c] sm:$0xf] %vm1642_vm8, %v1641_v8 }
 0x153   : > { %s1887_s2 = sshll.u32 %s2070_s9, 2  ;;  %s1888_s3 = sshll.u32 %s2074_s10, 5 }
 0x154   : > { %s1664_s4 = sadd.s32 %s1888_s3, %s1887_s2  ;;  %s1677_s5 = sshll.u32 %s2709_s21, 4  ;;  %s1678_s5 = int_to_ptr.vmem [resolvable:$true] %s1677_s5 }
 0x155   : > { %s1889_s14 = sshll.u32 %s1664_s4, 2  ;;  %s2092_s24 = smov 256  }
 0x156   : > { %s1666_s23 = scalar_lea.hbm %s2786_s1, %s1889_s14  ;;  %1894 = sst [smem:[#allocation7]] (%p2173_p9), %s2092_s24 }
 0x157   : > { %s1679_s18 = sshll.u32 %s1666_s23, 4  ;;  %s2093_s28 = smov 1024   ;;  %s1680_s18 = int_to_ptr.hbm [resolvable:$true] %s1679_s18 }
 0x158   : > { %1895 = sst [smem:[#allocation7 + $0x1]] (%p2173_p9), %s2093_s28  ;;  %s2094_s9 = smov 4  }
 0x159   : > { %1896 = sst [smem:[#allocation7 + $0x2]] (%p2173_p9), %s2094_s9  ;;  %s2095_s10 = smov 64  }
 0x15a   : > { %1897 = sst [smem:[#allocation7 + $0x3]] (%p2173_p9), %s2095_s10  ;;  %s2096_s20 = smov [#allocation6]  }
 0x15b   : > { %1898 = sst [smem:[#allocation7 + $0x4]] (%p2173_p9), %s2095_s10  ;;  %s2097_s29 = smov 0  }
 0x15c   : > { %1899 = sst [smem:[#allocation7 + $0x5]] (%p2173_p9), %s2094_s9 }
 0x15d   : > { %1900 = dma.general (%p2173_p9), %s1678_s5, 512, %s1680_s18, %s1653_s26, %s2096_s20, [#allocation7], %s2097_s29, 0  }
 0x15e PF: > { %p1911_p3 = scmp.ge.s32.totalorder %s2086_s13, 2  ;;  %s1707_s30 = sand.u32 1, %s2058_s6  }
 0x15f   : > { %s1708_s17 = scalar_lea.sflag [#allocation4], %s1707_s30 }
 0x160   : > { %p1907_p5 = pnand %p1911_p3, %p2179_p12 }
 0x162   : > { %p1908_p6 = pneg %p1907_p5 }
 0x164   : > { %2053 = dma.done.wait (%p1908_p6), %s1708_s17, 512  }
 0x165   : > { %2055 = vsyncadd (%p1908_p6), %s1708_s17, 4294966784  ;;  %s17_s13 = sadd.s32 1, %s2086_s13   ;;  %s2799_s22 = sld [smem:[#allocation10_spill]] }
 0x166   : > { %p14_p7 = scmp.ge.s32.totalorder %s17_s13, 10   ;;  %s2800_s6 = smov %s2062_s7 }
 0x167   : > { %s2801_s7 = smov %s2066_s8  ;;  %s2802_s8 = smov %s2186_s27 }
 0x168   : > { %s2803_s9 = smov %s2078_s11  ;;  %s2804_s10 = smov %s2082_s12 }
 0x169   : > { %s2805_s11 = smov %s2808_s16  ;;  %16 = sbr.rel (!%p14_p7) target bundleno = 7 (0x7), region = 75 }
 0x16b   : > { %s2806_s12 = smov %s2799_s22 }
 0x16e   :  { %1714 = vsyncpa [#allocation3], 1 }
 0x16f   :  { %1716 = vsyncpa [#allocation3 + $0x1], 1 }
 0x170   :  { %1717 = vsyncpa [#allocation4], 1 }
 0x171   :  { %1719 = vsyncpa [#allocation4 + $0x1], 1 }

</bundles_post_ra>
